<compile_context>
chip_gen: v7x
topology: tpu7x:2x2x1
jax: 0.10.0
libtpu: 0.0.40
codegen_flags: <defaults>
</compile_context>

<pallas_src>
import functools

import jax
import jax.numpy as jnp
from jax import lax
from jax.experimental import pallas as pl
from jax.experimental.pallas import tpu as pltpu


def _round_up(a, b):
    return ((a + b - 1) // b) * b


def _vmem_capacity_bytes():
    try:
        info = pltpu.get_tpu_info()
        cap = getattr(info, "vmem_capacity_bytes", None)
        if cap:
            return int(cap)
    except Exception:
        pass
    return 64 * 1024 * 1024  # conservative fallback (v7x physical)


# Labels above this count use a one-hot f32 MXU matmul instead of the VPU select loop.
_MXU_LABEL_THRESHOLD = 16


def _class_gather(idx, w_t_ref, b_t_ref, out_shape):
    """idx: (1, T) int32; w_t_ref / b_t_ref: (C, L) VMEM refs -> (C, T) class scale/bias."""
    num_labels = w_t_ref.shape[1]
    if num_labels > _MXU_LABEL_THRESHOLD:
        # One-hot matmul: moves O(L) work per element onto the (otherwise idle) MXU slot.
        onehot = (lax.broadcasted_iota(jnp.int32, (num_labels, idx.shape[1]), 0)
                  == idx).astype(jnp.float32)                                  # (L, T)
        class_w = jnp.dot(w_t_ref[...], onehot, preferred_element_type=jnp.float32)
        class_b = jnp.dot(b_t_ref[...], onehot, preferred_element_type=jnp.float32)
    else:
        # VPU select gather: one compare per label (on the 1-row idx) + two selects, mask reused.
        class_w = jnp.zeros(out_shape, jnp.float32)
        class_b = jnp.zeros(out_shape, jnp.float32)
        for lbl in range(num_labels):
            m = idx == lbl                                                     # (1, T) bool
            class_w = jnp.where(m, w_t_ref[:, lbl:lbl + 1], class_w)           # (C,1) vs (C,T)
            class_b = jnp.where(m, b_t_ref[:, lbl:lbl + 1], class_b)
    return class_w, class_b


# --------------------------------------------------------------------------------------
# Fused path: whole (1, C, HW) sample resident in VMEM.  grid = (N,), "parallel".
# x is read once; centered (two-pass) variance for better numerics at zero extra HBM cost.
# --------------------------------------------------------------------------------------
def _fused_kernel(x_ref, idx_ref, w_t_ref, b_t_ref, o_ref, *, hw):
    x = x_ref[0].astype(jnp.float32)                                  # (C, HW)
    inv_hw = jnp.float32(1.0 / hw)
    mean = jnp.sum(x, axis=1, keepdims=True) * inv_hw                 # (C, 1)
    centered = x - mean
    var = jnp.sum(centered * centered, axis=1, keepdims=True) * inv_hw
    normalized = centered * lax.rsqrt(var + jnp.float32(1e-5))

    idx = idx_ref[0].astype(jnp.int32)                                # (1, HW)
    class_w, class_b = _class_gather(idx, w_t_ref, b_t_ref, normalized.shape)
    o_ref[0] = (normalized * class_w + class_b).astype(o_ref.dtype)


# --------------------------------------------------------------------------------------
# Tiled fallback, pass 1: per-(n, c) statistics accumulated over HW tiles.
# grid = (N, T); T is "arbitrary" and accumulates into the resident (1, C, 2) stats block
# (col 0 = sum -> mean, col 1 = sum-of-squares -> rstd after finalization).
# NOTE: single-pass E[x^2] - mean^2 can cancel if |mean| >> std; acceptable for activations.
# --------------------------------------------------------------------------------------
def _stats_kernel(x_ref, stats_ref, *, hw, tile):
    t = pl.program_id(1)
    x = x_ref[0].astype(jnp.float32)                                  # (C, TILE)

    if hw % tile != 0:
        # Unpadded input + cdiv grid: mask the ragged lanes of the last tile to 0 BEFORE
        # both reductions (edge-block reads beyond HW are undefined).
        lane = lax.broadcasted_iota(jnp.int32, x.shape, 1) + t * tile
        x = jnp.where(lane < hw, x, 0.0)

    s = jnp.sum(x, axis=1, keepdims=True)                             # (C, 1)
    ss = jnp.sum(x * x, axis=1, keepdims=True)                        # (C, 1)
    both = jnp.concatenate([s, ss], axis=1)                           # (C, 2)

    @pl.when(t == 0)
    def _():
        stats_ref[0] = both

    @pl.when(t != 0)
    def _():
        stats_ref[0] += both

    @pl.when(t == pl.num_programs(1) - 1)
    def _():
        inv_hw = jnp.float32(1.0 / hw)
        vals = stats_ref[0]                                           # (C, 2)
        m = vals[:, 0:1] * inv_hw
        var = vals[:, 1:2] * inv_hw - m * m                           # biased variance
        stats_ref[0] = jnp.concatenate([m, lax.rsqrt(var + jnp.float32(1e-5))], axis=1)


# --------------------------------------------------------------------------------------
# Tiled fallback, pass 2: normalize + class-conditional affine.  grid = (N, T), both
# "parallel" (megacore-shardable on v7x).  Ragged last tile: OOB reads are never used for
# output (Pallas clips edge-block writes), so no mask is needed here.
# --------------------------------------------------------------------------------------
def _norm_affine_kernel(x_ref, stats_ref, idx_ref, w_t_ref, b_t_ref, o_ref):
    x = x_ref[0].astype(jnp.float32)                                  # (C, TILE)
    stats = stats_ref[0]                                              # (C, 2) = [mean, rstd]
    normalized = (x - stats[:, 0:1]) * stats[:, 1:2]

    idx = idx_ref[0].astype(jnp.int32)                                # (1, TILE)
    class_w, class_b = _class_gather(idx, w_t_ref, b_t_ref, normalized.shape)
    o_ref[0] = (normalized * class_w + class_b).astype(o_ref.dtype)


# --------------------------------------------------------------------------------------
# Wrapper
# --------------------------------------------------------------------------------------
def spade_light_forward(x, segmap, weight, bias, *, force_two_pass=False, max_tile_lanes=65536):
    """x: (N, C, H, W); segmap: (N, L, Hs, Ws); weight/bias: (L, C)."""
    n, c, h, w = x.shape
    l = segmap.shape[1]
    hw = h * w

    # Low-res argmax, then nearest-upsample ONLY the (narrow-dtype) index plane
    # (argmax over channels commutes exactly with nearest replication).
    idx_dtype = jnp.int8 if l <= 127 else jnp.int32
    idx = jnp.argmax(segmap, axis=1).astype(idx_dtype)                # (N, Hs, Ws)
    hs, ws = idx.shape[1], idx.shape[2]
    if (hs, ws) != (h, w):
        ridx = (jnp.arange(h) * hs // h).astype(jnp.int32)            # floor(i*in/out) == torch 'nearest'
        cidx = (jnp.arange(w) * ws // w).astype(jnp.int32)
        idx = idx[:, ridx, :][:, :, cidx]                             # (N, H, W)
    idx = idx.reshape(n, 1, hw)

    xf = x.reshape(n, c, hw)
    w_t = jnp.transpose(weight)                                       # (C, L), VMEM-resident
    b_t = jnp.transpose(bias)                                         # (C, L)

    vmem_cap = _vmem_capacity_bytes()
    c_pad = _round_up(c, 8)                                           # f32 sublane padding
    x_bytes = jnp.dtype(x.dtype).itemsize

    # ------------------ fused single-pass path ------------------
    hw_pad = _round_up(hw, 128)
    slab_io = c_pad * hw_pad * x_bytes
    slab_f32 = c_pad * hw_pad * 4
    # 2x double-buffered in/out x blocks + ~5 f32 temporaries + int8 idx (conservative).
    fused_need = 2 * 2 * slab_io + 5 * slab_f32 + 2 * 8 * hw_pad
    fused_budget = vmem_cap // 2                                      # 64 MiB v5e/v6e, 32 MiB v7x

    if fused_need <= fused_budget and not force_two_pass:
        # TODO(synk): when N == 1 on v7x, also split HW onto a parallel grid axis so the
        # second TensorCore is not idle.
        out = pl.pallas_call(
            functools.partial(_fused_kernel, hw=hw),
            out_shape=jax.ShapeDtypeStruct((n, c, hw), x.dtype),
            grid_spec=pltpu.PrefetchScalarGridSpec(
                num_scalar_prefetch=0,
                grid=(n,),
                in_specs=[
                    pl.BlockSpec((1, c, hw), lambda i: (i, 0, 0)),    # x (whole sample)
                    pl.BlockSpec((1, 1, hw), lambda i: (i, 0, 0)),    # idx (int8)
                    pl.BlockSpec((c, l), lambda i: (0, 0)),           # weight^T (resident)
                    pl.BlockSpec((c, l), lambda i: (0, 0)),           # bias^T   (resident)
                ],
                out_specs=pl.BlockSpec((1, c, hw), lambda i: (i, 0, 0)),
            ),
            compiler_params=pltpu.CompilerParams(
                dimension_semantics=("parallel",),
                vmem_limit_bytes=int(fused_budget)),
        )(xf, idx, w_t, b_t)
        return out.reshape(n, c, h, w)

    # ------------------ two-pass tiled fallback ------------------
    # Lane-dense HW tiles, sized against a VMEM budget (no wrapper padding; cdiv grid).
    tile_budget = vmem_cap // 4
    per_lane = c_pad * (2 * 2 * x_bytes + 3 * 4) + 2                  # pass-2 bytes per HW lane
    max_tile = max(128, (tile_budget // per_lane) // 128 * 128)
    tile = int(min(max_tile, max_tile_lanes, _round_up(hw, 128)))
    t_steps = pl.cdiv(hw, tile)

    stats = pl.pallas_call(
        functools.partial(_stats_kernel, hw=hw, tile=tile),
        out_shape=jax.ShapeDtypeStruct((n, c, 2), jnp.float32),
        grid_spec=pltpu.PrefetchScalarGridSpec(
            num_scalar_prefetch=0,
            grid=(n, t_steps),
            in_specs=[pl.BlockSpec((1, c, tile), lambda i, t: (i, 0, t))],
            out_specs=pl.BlockSpec((1, c, 2), lambda i, t: (i, 0, 0)),
        ),
        compiler_params=pltpu.CompilerParams(
            dimension_semantics=("parallel", "arbitrary"),
            vmem_limit_bytes=int(vmem_cap // 2)),
    )(xf)

    out = pl.pallas_call(
        _norm_affine_kernel,
        out_shape=jax.ShapeDtypeStruct((n, c, hw), x.dtype),
        grid_spec=pltpu.PrefetchScalarGridSpec(
            num_scalar_prefetch=0,
            grid=(n, t_steps),
            in_specs=[
                pl.BlockSpec((1, c, tile), lambda i, t: (i, 0, t)),   # x
                pl.BlockSpec((1, c, 2), lambda i, t: (i, 0, 0)),      # stats (mean, rstd)
                pl.BlockSpec((1, 1, tile), lambda i, t: (i, 0, t)),   # idx (int8)
                pl.BlockSpec((c, l), lambda i, t: (0, 0)),            # weight^T (resident)
                pl.BlockSpec((c, l), lambda i, t: (0, 0)),            # bias^T   (resident)
            ],
            out_specs=pl.BlockSpec((1, c, tile), lambda i, t: (i, 0, t)),
        ),
        compiler_params=pltpu.CompilerParams(
            dimension_semantics=("parallel", "parallel"),
            vmem_limit_bytes=int(vmem_cap // 2)),
    )(xf, stats, idx, w_t, b_t)

    return out.reshape(n, c, h, w)


# --------------------------------------------------------------------------------------
# Pure-JAX reference (argmax at FULL resolution, like the PyTorch module).
# --------------------------------------------------------------------------------------
def nearest_resize_nchw(seg, h_out, w_out):
    n, l, h_in, w_in = seg.shape
    if (h_in, w_in) == (h_out, w_out):
        return seg
    ridx = (jnp.arange(h_out) * h_in // h_out).astype(jnp.int32)
    cidx = (jnp.arange(w_out) * w_in // w_out).astype(jnp.int32)
    return seg[:, :, ridx, :][:, :, :, cidx]


def reference_forward(x, segmap, weight, bias):
    n, c, h, w = x.shape
    seg = nearest_resize_nchw(segmap, h, w)
    mean = jnp.mean(x, axis=(2, 3), keepdims=True)
    var = jnp.mean((x - mean) ** 2, axis=(2, 3), keepdims=True)
    normalized = (x - mean) / jnp.sqrt(var + 1e-5)
    idx = jnp.argmax(seg, axis=1)                                     # (N, H, W)
    class_w = jnp.transpose(weight[idx], (0, 3, 1, 2))                # (N, C, H, W)
    class_b = jnp.transpose(bias[idx], (0, 3, 1, 2))
    return normalized * class_w + class_b


if __name__ == "__main__":
    # SPADELight(norm_nc=4, label_nc=8): x is (N, norm_nc, H, W), segmap (N, label_nc, Hs, Ws)
    key = jax.random.PRNGKey(0)
    k1, k2, k3, k4, k5, k6 = jax.random.split(key, 6)

    N, C, L = 2, 4, 8
    # ClassAffine params: weight ~ U(0,1) (nn.init.uniform_); bias is zero-initialized in the
    # module but we use a small non-zero bias so the bias gather path is actually verified.
    affine_weight = jax.random.uniform(k3, (L, C), dtype=jnp.float32)
    affine_bias = 0.1 * jax.random.normal(k6, (L, C), dtype=jnp.float32)

    # --- case 1: fused single-pass path (whole sample resident in VMEM) ---
    H, W, Hs, Ws = 16, 16, 8, 8
    x = jax.random.normal(k1, (N, C, H, W), dtype=jnp.float32) * 0.7 + 0.3
    segmap = jax.random.uniform(k2, (N, L, Hs, Ws), dtype=jnp.float32)

    out = jax.block_until_ready(spade_light_forward(x, segmap, affine_weight, affine_bias))
    ref = reference_forward(x, segmap, affine_weight, affine_bias)
    assert out.shape == (N, C, H, W)
    assert jnp.allclose(out, ref, atol=2e-5, rtol=1e-5), "fused path mismatch vs JAX reference"

    # --- case 2: two-pass tiled fallback with a ragged last HW tile (no padding) ---
    H2, W2, Hs2, Ws2 = 18, 18, 9, 9
    x2 = jax.random.normal(k4, (N, C, H2, W2), dtype=jnp.float32) * 1.3 - 0.5
    segmap2 = jax.random.uniform(k5, (N, L, Hs2, Ws2), dtype=jnp.float32)

    out2 = jax.block_until_ready(
        spade_light_forward(x2, segmap2, affine_weight, affine_bias,
                            force_two_pass=True, max_tile_lanes=128))
    ref2 = reference_forward(x2, segmap2, affine_weight, affine_bias)
    assert out2.shape == (N, C, H2, W2)
    assert jnp.allclose(out2, ref2, atol=2e-5, rtol=1e-5), "tiled path mismatch vs JAX reference"

    print("KERNEL_OK")
</pallas_src>

<mosaic_0001>
module attributes {stable_mosaic.version = 11 : i64} {
  func.func @_fused_kernel(%arg0: i32, %arg1: memref<1x4x256xf32, #tpu.memory_space<vmem>>, %arg2: memref<1x1x256xi8, #tpu.memory_space<vmem>>, %arg3: memref<4x8xf32, #tpu.memory_space<vmem>>, %arg4: memref<4x8xf32, #tpu.memory_space<vmem>>, %arg5: memref<1x4x256xf32, #tpu.memory_space<vmem>>) attributes {dimension_semantics = [#tpu.dimension_semantics<parallel>], iteration_bounds = array<i64: 2>, scalar_prefetch = 0 : i64, scratch_operands = 0 : i64, tpu.core_type = #tpu.core_type<tc>, window_params = [{transform_indices = @transform_0, window_bounds = array<i64: 1, 4, 256>}, {transform_indices = @transform_1, window_bounds = array<i64: 1, 1, 256>}, {pipeline_mode = #tpu.pipeline_mode<synchronous>, transform_indices = @transform_2, window_bounds = array<i64: 4, 8>}, {pipeline_mode = #tpu.pipeline_mode<synchronous>, transform_indices = @transform_3, window_bounds = array<i64: 4, 8>}, {transform_indices = @transform_4, window_bounds = array<i64: 1, 4, 256>}]} {
    %c0 = arith.constant 0 : index
    %c0_0 = arith.constant 0 : index
    %c0_1 = arith.constant 0 : index
    %0 = vector.load %arg1[%c0, %c0_0, %c0_1] : memref<1x4x256xf32, #tpu.memory_space<vmem>>, vector<1x4x256xf32>
    %1 = vector.shape_cast %0 : vector<1x4x256xf32> to vector<4x256xf32>
    %cst = arith.constant dense<0.000000e+00> : vector<4xf32>
    %2 = vector.multi_reduction <add>, %1, %cst [1] : vector<4x256xf32> to vector<4xf32>
    %3 = vector.shape_cast %2 : vector<4xf32> to vector<4x1xf32>
    %cst_2 = arith.constant 3.906250e-03 : f32
    %4 = vector.broadcast %cst_2 : f32 to vector<4x1xf32>
    %5 = arith.mulf %3, %4 : vector<4x1xf32>
    %6 = vector.broadcast %5 : vector<4x1xf32> to vector<4x256xf32>
    %7 = arith.subf %1, %6 : vector<4x256xf32>
    %8 = arith.mulf %7, %7 : vector<4x256xf32>
    %cst_3 = arith.constant dense<0.000000e+00> : vector<4xf32>
    %9 = vector.multi_reduction <add>, %8, %cst_3 [1] : vector<4x256xf32> to vector<4xf32>
    %10 = vector.shape_cast %9 : vector<4xf32> to vector<4x1xf32>
    %cst_4 = arith.constant 3.906250e-03 : f32
    %11 = vector.broadcast %cst_4 : f32 to vector<4x1xf32>
    %12 = arith.mulf %10, %11 : vector<4x1xf32>
    %cst_5 = arith.constant 9.99999974E-6 : f32
    %13 = vector.broadcast %cst_5 : f32 to vector<4x1xf32>
    %14 = arith.addf %12, %13 : vector<4x1xf32>
    %15 = math.rsqrt %14 : vector<4x1xf32>
    %16 = vector.broadcast %15 : vector<4x1xf32> to vector<4x256xf32>
    %17 = arith.mulf %7, %16 : vector<4x256xf32>
    %c0_6 = arith.constant 0 : index
    %c0_7 = arith.constant 0 : index
    %c0_8 = arith.constant 0 : index
    %18 = vector.load %arg2[%c0_6, %c0_7, %c0_8] : memref<1x1x256xi8, #tpu.memory_space<vmem>>, vector<1x1x256xi8>
    %19 = vector.shape_cast %18 : vector<1x1x256xi8> to vector<1x256xi8>
    %20 = arith.extsi %19 : vector<1x256xi8> to vector<1x256xi32>
    %cst_9 = arith.constant 0.000000e+00 : f32
    %21 = vector.broadcast %cst_9 : f32 to vector<4x256xf32>
    %cst_10 = arith.constant 0.000000e+00 : f32
    %22 = vector.broadcast %cst_10 : f32 to vector<4x256xf32>
    %c0_i32 = arith.constant 0 : i32
    %23 = vector.broadcast %c0_i32 : i32 to vector<1x256xi32>
    %24 = arith.cmpi eq, %20, %23 : vector<1x256xi32>
    %c0_11 = arith.constant 0 : index
    %c0_12 = arith.constant 0 : index
    %25 = vector.load %arg3[%c0_11, %c0_12] : memref<4x8xf32, #tpu.memory_space<vmem>>, vector<4x1xf32>
    %26 = vector.shape_cast %24 : vector<1x256xi1> to vector<1x256xi1>
    %27 = vector.broadcast %26 : vector<1x256xi1> to vector<4x256xi1>
    %28 = vector.shape_cast %25 : vector<4x1xf32> to vector<4x1xf32>
    %29 = vector.broadcast %28 : vector<4x1xf32> to vector<4x256xf32>
    %30 = arith.select %27, %29, %21 : vector<4x256xi1>, vector<4x256xf32>
    %c0_13 = arith.constant 0 : index
    %c0_14 = arith.constant 0 : index
    %31 = vector.load %arg4[%c0_13, %c0_14] : memref<4x8xf32, #tpu.memory_space<vmem>>, vector<4x1xf32>
    %32 = vector.shape_cast %24 : vector<1x256xi1> to vector<1x256xi1>
    %33 = vector.broadcast %32 : vector<1x256xi1> to vector<4x256xi1>
    %34 = vector.shape_cast %31 : vector<4x1xf32> to vector<4x1xf32>
    %35 = vector.broadcast %34 : vector<4x1xf32> to vector<4x256xf32>
    %36 = arith.select %33, %35, %22 : vector<4x256xi1>, vector<4x256xf32>
    %c1_i32 = arith.constant 1 : i32
    %37 = vector.broadcast %c1_i32 : i32 to vector<1x256xi32>
    %38 = arith.cmpi eq, %20, %37 : vector<1x256xi32>
    %c0_15 = arith.constant 0 : index
    %c1 = arith.constant 1 : index
    %39 = vector.load %arg3[%c0_15, %c1] : memref<4x8xf32, #tpu.memory_space<vmem>>, vector<4x1xf32>
    %40 = vector.shape_cast %38 : vector<1x256xi1> to vector<1x256xi1>
    %41 = vector.broadcast %40 : vector<1x256xi1> to vector<4x256xi1>
    %42 = vector.shape_cast %39 : vector<4x1xf32> to vector<4x1xf32>
    %43 = vector.broadcast %42 : vector<4x1xf32> to vector<4x256xf32>
    %44 = arith.select %41, %43, %30 : vector<4x256xi1>, vector<4x256xf32>
    %c0_16 = arith.constant 0 : index
    %c1_17 = arith.constant 1 : index
    %45 = vector.load %arg4[%c0_16, %c1_17] : memref<4x8xf32, #tpu.memory_space<vmem>>, vector<4x1xf32>
    %46 = vector.shape_cast %38 : vector<1x256xi1> to vector<1x256xi1>
    %47 = vector.broadcast %46 : vector<1x256xi1> to vector<4x256xi1>
    %48 = vector.shape_cast %45 : vector<4x1xf32> to vector<4x1xf32>
    %49 = vector.broadcast %48 : vector<4x1xf32> to vector<4x256xf32>
    %50 = arith.select %47, %49, %36 : vector<4x256xi1>, vector<4x256xf32>
    %c2_i32 = arith.constant 2 : i32
    %51 = vector.broadcast %c2_i32 : i32 to vector<1x256xi32>
    %52 = arith.cmpi eq, %20, %51 : vector<1x256xi32>
    %c0_18 = arith.constant 0 : index
    %c2 = arith.constant 2 : index
    %53 = vector.load %arg3[%c0_18, %c2] : memref<4x8xf32, #tpu.memory_space<vmem>>, vector<4x1xf32>
    %54 = vector.shape_cast %52 : vector<1x256xi1> to vector<1x256xi1>
    %55 = vector.broadcast %54 : vector<1x256xi1> to vector<4x256xi1>
    %56 = vector.shape_cast %53 : vector<4x1xf32> to vector<4x1xf32>
    %57 = vector.broadcast %56 : vector<4x1xf32> to vector<4x256xf32>
    %58 = arith.select %55, %57, %44 : vector<4x256xi1>, vector<4x256xf32>
    %c0_19 = arith.constant 0 : index
    %c2_20 = arith.constant 2 : index
    %59 = vector.load %arg4[%c0_19, %c2_20] : memref<4x8xf32, #tpu.memory_space<vmem>>, vector<4x1xf32>
    %60 = vector.shape_cast %52 : vector<1x256xi1> to vector<1x256xi1>
    %61 = vector.broadcast %60 : vector<1x256xi1> to vector<4x256xi1>
    %62 = vector.shape_cast %59 : vector<4x1xf32> to vector<4x1xf32>
    %63 = vector.broadcast %62 : vector<4x1xf32> to vector<4x256xf32>
    %64 = arith.select %61, %63, %50 : vector<4x256xi1>, vector<4x256xf32>
    %c3_i32 = arith.constant 3 : i32
    %65 = vector.broadcast %c3_i32 : i32 to vector<1x256xi32>
    %66 = arith.cmpi eq, %20, %65 : vector<1x256xi32>
    %c0_21 = arith.constant 0 : index
    %c3 = arith.constant 3 : index
    %67 = vector.load %arg3[%c0_21, %c3] : memref<4x8xf32, #tpu.memory_space<vmem>>, vector<4x1xf32>
    %68 = vector.shape_cast %66 : vector<1x256xi1> to vector<1x256xi1>
    %69 = vector.broadcast %68 : vector<1x256xi1> to vector<4x256xi1>
    %70 = vector.shape_cast %67 : vector<4x1xf32> to vector<4x1xf32>
    %71 = vector.broadcast %70 : vector<4x1xf32> to vector<4x256xf32>
    %72 = arith.select %69, %71, %58 : vector<4x256xi1>, vector<4x256xf32>
    %c0_22 = arith.constant 0 : index
    %c3_23 = arith.constant 3 : index
    %73 = vector.load %arg4[%c0_22, %c3_23] : memref<4x8xf32, #tpu.memory_space<vmem>>, vector<4x1xf32>
    %74 = vector.shape_cast %66 : vector<1x256xi1> to vector<1x256xi1>
    %75 = vector.broadcast %74 : vector<1x256xi1> to vector<4x256xi1>
    %76 = vector.shape_cast %73 : vector<4x1xf32> to vector<4x1xf32>
    %77 = vector.broadcast %76 : vector<4x1xf32> to vector<4x256xf32>
    %78 = arith.select %75, %77, %64 : vector<4x256xi1>, vector<4x256xf32>
    %c4_i32 = arith.constant 4 : i32
    %79 = vector.broadcast %c4_i32 : i32 to vector<1x256xi32>
    %80 = arith.cmpi eq, %20, %79 : vector<1x256xi32>
    %c0_24 = arith.constant 0 : index
    %c4 = arith.constant 4 : index
    %81 = vector.load %arg3[%c0_24, %c4] : memref<4x8xf32, #tpu.memory_space<vmem>>, vector<4x1xf32>
    %82 = vector.shape_cast %80 : vector<1x256xi1> to vector<1x256xi1>
    %83 = vector.broadcast %82 : vector<1x256xi1> to vector<4x256xi1>
    %84 = vector.shape_cast %81 : vector<4x1xf32> to vector<4x1xf32>
    %85 = vector.broadcast %84 : vector<4x1xf32> to vector<4x256xf32>
    %86 = arith.select %83, %85, %72 : vector<4x256xi1>, vector<4x256xf32>
    %c0_25 = arith.constant 0 : index
    %c4_26 = arith.constant 4 : index
    %87 = vector.load %arg4[%c0_25, %c4_26] : memref<4x8xf32, #tpu.memory_space<vmem>>, vector<4x1xf32>
    %88 = vector.shape_cast %80 : vector<1x256xi1> to vector<1x256xi1>
    %89 = vector.broadcast %88 : vector<1x256xi1> to vector<4x256xi1>
    %90 = vector.shape_cast %87 : vector<4x1xf32> to vector<4x1xf32>
    %91 = vector.broadcast %90 : vector<4x1xf32> to vector<4x256xf32>
    %92 = arith.select %89, %91, %78 : vector<4x256xi1>, vector<4x256xf32>
    %c5_i32 = arith.constant 5 : i32
    %93 = vector.broadcast %c5_i32 : i32 to vector<1x256xi32>
    %94 = arith.cmpi eq, %20, %93 : vector<1x256xi32>
    %c0_27 = arith.constant 0 : index
    %c5 = arith.constant 5 : index
    %95 = vector.load %arg3[%c0_27, %c5] : memref<4x8xf32, #tpu.memory_space<vmem>>, vector<4x1xf32>
    %96 = vector.shape_cast %94 : vector<1x256xi1> to vector<1x256xi1>
    %97 = vector.broadcast %96 : vector<1x256xi1> to vector<4x256xi1>
    %98 = vector.shape_cast %95 : vector<4x1xf32> to vector<4x1xf32>
    %99 = vector.broadcast %98 : vector<4x1xf32> to vector<4x256xf32>
    %100 = arith.select %97, %99, %86 : vector<4x256xi1>, vector<4x256xf32>
    %c0_28 = arith.constant 0 : index
    %c5_29 = arith.constant 5 : index
    %101 = vector.load %arg4[%c0_28, %c5_29] : memref<4x8xf32, #tpu.memory_space<vmem>>, vector<4x1xf32>
    %102 = vector.shape_cast %94 : vector<1x256xi1> to vector<1x256xi1>
    %103 = vector.broadcast %102 : vector<1x256xi1> to vector<4x256xi1>
    %104 = vector.shape_cast %101 : vector<4x1xf32> to vector<4x1xf32>
    %105 = vector.broadcast %104 : vector<4x1xf32> to vector<4x256xf32>
    %106 = arith.select %103, %105, %92 : vector<4x256xi1>, vector<4x256xf32>
    %c6_i32 = arith.constant 6 : i32
    %107 = vector.broadcast %c6_i32 : i32 to vector<1x256xi32>
    %108 = arith.cmpi eq, %20, %107 : vector<1x256xi32>
    %c0_30 = arith.constant 0 : index
    %c6 = arith.constant 6 : index
    %109 = vector.load %arg3[%c0_30, %c6] : memref<4x8xf32, #tpu.memory_space<vmem>>, vector<4x1xf32>
    %110 = vector.shape_cast %108 : vector<1x256xi1> to vector<1x256xi1>
    %111 = vector.broadcast %110 : vector<1x256xi1> to vector<4x256xi1>
    %112 = vector.shape_cast %109 : vector<4x1xf32> to vector<4x1xf32>
    %113 = vector.broadcast %112 : vector<4x1xf32> to vector<4x256xf32>
    %114 = arith.select %111, %113, %100 : vector<4x256xi1>, vector<4x256xf32>
    %c0_31 = arith.constant 0 : index
    %c6_32 = arith.constant 6 : index
    %115 = vector.load %arg4[%c0_31, %c6_32] : memref<4x8xf32, #tpu.memory_space<vmem>>, vector<4x1xf32>
    %116 = vector.shape_cast %108 : vector<1x256xi1> to vector<1x256xi1>
    %117 = vector.broadcast %116 : vector<1x256xi1> to vector<4x256xi1>
    %118 = vector.shape_cast %115 : vector<4x1xf32> to vector<4x1xf32>
    %119 = vector.broadcast %118 : vector<4x1xf32> to vector<4x256xf32>
    %120 = arith.select %117, %119, %106 : vector<4x256xi1>, vector<4x256xf32>
    %c7_i32 = arith.constant 7 : i32
    %121 = vector.broadcast %c7_i32 : i32 to vector<1x256xi32>
    %122 = arith.cmpi eq, %20, %121 : vector<1x256xi32>
    %c0_33 = arith.constant 0 : index
    %c7 = arith.constant 7 : index
    %123 = vector.load %arg3[%c0_33, %c7] : memref<4x8xf32, #tpu.memory_space<vmem>>, vector<4x1xf32>
    %124 = vector.shape_cast %122 : vector<1x256xi1> to vector<1x256xi1>
    %125 = vector.broadcast %124 : vector<1x256xi1> to vector<4x256xi1>
    %126 = vector.shape_cast %123 : vector<4x1xf32> to vector<4x1xf32>
    %127 = vector.broadcast %126 : vector<4x1xf32> to vector<4x256xf32>
    %128 = arith.select %125, %127, %114 : vector<4x256xi1>, vector<4x256xf32>
    %c0_34 = arith.constant 0 : index
    %c7_35 = arith.constant 7 : index
    %129 = vector.load %arg4[%c0_34, %c7_35] : memref<4x8xf32, #tpu.memory_space<vmem>>, vector<4x1xf32>
    %130 = vector.shape_cast %122 : vector<1x256xi1> to vector<1x256xi1>
    %131 = vector.broadcast %130 : vector<1x256xi1> to vector<4x256xi1>
    %132 = vector.shape_cast %129 : vector<4x1xf32> to vector<4x1xf32>
    %133 = vector.broadcast %132 : vector<4x1xf32> to vector<4x256xf32>
    %134 = arith.select %131, %133, %120 : vector<4x256xi1>, vector<4x256xf32>
    %135 = arith.mulf %17, %128 : vector<4x256xf32>
    %136 = arith.addf %135, %134 : vector<4x256xf32>
    %c0_36 = arith.constant 0 : index
    %c0_37 = arith.constant 0 : index
    %c0_38 = arith.constant 0 : index
    %137 = vector.load %arg5[%c0_36, %c0_37, %c0_38] : memref<1x4x256xf32, #tpu.memory_space<vmem>>, vector<1x4x256xf32>
    %138 = vector.shape_cast %137 : vector<1x4x256xf32> to vector<4x256xf32>
    %139 = vector.shape_cast %136 : vector<4x256xf32> to vector<1x4x256xf32>
    tpu.vector_store %arg5[%c0_36, %c0_37, %c0_38], %139 {strides = array<i32>} : memref<1x4x256xf32, #tpu.memory_space<vmem>>, vector<1x4x256xf32>,
    return
  }
  func.func @transform_0(%arg0: i32) -> (i32, i32, i32) {
    %c0_i32 = arith.constant 0 : i32
    %c0_i32_0 = arith.constant 0 : i32
    %c0_i32_1 = arith.constant 0 : i32
    return %arg0, %c0_i32, %c0_i32_0 : i32, i32, i32
  }
  func.func @transform_1(%arg0: i32) -> (i32, i32, i32) {
    %c0_i32 = arith.constant 0 : i32
    %c0_i32_0 = arith.constant 0 : i32
    %c0_i32_1 = arith.constant 0 : i32
    return %arg0, %c0_i32, %c0_i32_0 : i32, i32, i32
  }
  func.func @transform_2(%arg0: i32) -> (i32, i32) {
    %c0_i32 = arith.constant 0 : i32
    %c0_i32_0 = arith.constant 0 : i32
    %c0_i32_1 = arith.constant 0 : i32
    return %c0_i32, %c0_i32_0 : i32, i32
  }
  func.func @transform_3(%arg0: i32) -> (i32, i32) {
    %c0_i32 = arith.constant 0 : i32
    %c0_i32_0 = arith.constant 0 : i32
    %c0_i32_1 = arith.constant 0 : i32
    return %c0_i32, %c0_i32_0 : i32, i32
  }
  func.func @transform_4(%arg0: i32) -> (i32, i32, i32) {
    %c0_i32 = arith.constant 0 : i32
    %c0_i32_0 = arith.constant 0 : i32
    %c0_i32_1 = arith.constant 0 : i32
    return %arg0, %c0_i32, %c0_i32_0 : i32, i32, i32
  }
}

</mosaic_0001>

<bundles_post_ra>
// kernel: tpu_custom_call.1
= control target key start
LH: loop header
LB: loop body
LE: loop exit
PB: predicated region body
PF: predicated region fallthrough
CT: control target
= control target key end

     0   :  { %9 = vsyncpa [#allocation3], 0  ;;  %s1172_s0 = inlined_call_operand.hbm [shape: f32[2,4,256], index: 0, kind: input, shape index: {}]   ;;  %s1173_s1 = inlined_call_operand.vmem [shape: s8[2,1,256], index: 1, kind: input, shape index: {}]   ;;  %s1174_s2 = inlined_call_operand.vmem [shape: f32[4,8], index: 2, kind: input, shape index: {}]   ;;  %s1175_s3 = inlined_call_operand.vmem [shape: f32[4,8], index: 3, kind: input, shape index: {}]   ;;  %s1176_s4 = inlined_call_operand.hbm [shape: f32[2,4,256], index: 4, kind: output, shape index: {}]  }
   0x1   :  { %11 = vsyncpa [#allocation3 + $0x1], 0 }
   0x2   :  { %12 = vsyncpa [#allocation4], 0 }
   0x3   :  { %14 = vsyncpa [#allocation4 + $0x1], 0  ;;  %s869_s15 = smov 0   ;;  %s871_s16 = smov 0  }
   0x4   :  { %s873_s17 = smov 0   ;;  %s875_s18 = smov 0  }
   0x5 LB: > { %s890_s19 = sadd.s32 4294967295, %s831_s18   ;;  %s644_s20 = sadd.s32 4294967294, %s831_s18   ;;  %s831_s18 = sphi %s875_s18, %s1191_s18   ;;  %s827_s17 = sphi %s873_s17, %s1190_s17   ;;  %s823_s16 = sphi %s871_s16, %s1189_s16   ;;  %s819_s15 = sphi %s869_s15, %s1188_s15  }
   0x6   : > { %s894_s21 = sadd.s32 1, %s831_s18   ;;  %s27_s22 = sadd.s32 1, %s827_s17 }
   0x7   : > { %s24_s23 = ssub.s32 %s831_s18, %s894_s21  ;;  %p34_p0 = scmp.ne.s32.totalorder %s827_s17, %s823_s16 }
   0x8   : > { %p25_p1 = scmp.eq.s32.totalorder %s24_s23, 0  ;;  %p35_p2 = scmp.eq.s32.totalorder %s831_s18, 0 }
   0x9   : > { %p40_p3 = scmp.ne.s32.totalorder %s823_s16, %s819_s15  ;;  %p41_p4 = scmp.eq.s32.totalorder %s890_s19, 0 }
   0xa   : > { %s906_s24 = scalar_select %p25_p1, %s827_s17, %s27_s22  }
   0xb   : > { %p908_p5 = por %p35_p2, %p34_p0  ;;  %p912_p6 = por %p41_p4, %p40_p3 }
   0xc   : > { %p132_p7 = scmp.eq.s32.totalorder %s890_s19, 1  ;;  %p138_p8 = scmp.eq.s32.totalorder %s644_s20, 1 }
   0xd   : > { %p673_p10 = scmp.lt.s32.totalorder %s831_s18, 2  ;;  %s164_s29 = sand.u32 1, %s827_s17  }
   0xe   : > { %p919_p11 = por %p132_p7, %p34_p0  ;;  %p923_p12 = por %p138_p8, %p40_p3 }
   0xf   : > { %s659_s30 = sshll.u32 %s831_s18, 7  ;;  %s647_s5 = sshll.u32 %s164_s29, 3 }
  0x10   : > { %s1180_s27 = scalar_select %p919_p11, 1, 0 }
  0x11   : > { %s1181_s28 = scalar_select %p923_p12, 1, 0 }
  0x12   : > { %s932_s8 = scalar_lea.hbm %s1172_s0, %s659_s30  ;;  %s168_s9 = scalar_lea.vmem [#allocation2], %s647_s5 }
  0x13   : > { %s176_s10 = sshll.u32 %s168_s9, 4  ;;  %p936_p13 = pnand %p673_p10, %p908_p5  ;;  %s940_s10 = int_to_ptr.vmem [resolvable:$true] %s176_s10 }
  0x14   : > { %s165_s12 = scalar_lea.sflag [#allocation3], %s164_s29  ;;  %s735_s13 = scalar_lea.hbm %s932_s8, 128 }
  0x15   : > { %p736_p2 = scmp.ne.s32.totalorder %s932_s8, %s735_s13  ;;  %p737_p3 = pneg %p936_p13 }
  0x16   : > { %s740_s22 = scalar_lea.hbm %s1172_s0, 256  ;;  %p741_p5 = scmp.lt.u32.totalorder %s932_s8, %s1172_s0 }
  0x17   : > { %p738_p4 = pnand %p737_p3, %p736_p2  ;;  %p742_p8 = scmp.lt.u32.totalorder %s740_s22, %s735_s13 }
  0x18   : > { %p744_p9 = scmp.lt.u32.totalorder %s735_s13, %s932_s8 }
  0x19   : > { %p739_p7 = pneg %p738_p4  ;;  %p743_p10 = por %p742_p8, %p741_p5 }
  0x1b   : > { %p745_p0 = por %p744_p9, %p743_p10 }
  0x1d   : > { %p746_p1 = pnand %p745_p0, %p739_p7 }
  0x1f   : > { %749 = shalt.err (!%p746_p1)
}
  0x20   : > { %s750_s29 = scalar_lea.vmem %s940_s10, 128  ;;  %s833_s30 = smov [#allocation2]  }
  0x21   : > { %p751_p2 = scmp.ne.s32.totalorder %s940_s10, %s750_s29  ;;  %s755_s5 = sshll.u32 %s833_s30, 4  ;;  %s756_s5 = int_to_ptr.vmem [resolvable:$false] %s755_s5 }
  0x22   : > { %s757_s6 = scalar_lea.vmem %s756_s5, 256  ;;  %p758_p11 = scmp.lt.s32.totalorder %s940_s10, %s756_s5 }
  0x23   : > { %p753_p4 = pnand %p751_p2, %p737_p3  ;;  %p759_p5 = scmp.lt.s32.totalorder %s757_s6, %s750_s29 }
  0x25   : > { %p754_p12 = pneg %p753_p4  ;;  %p760_p8 = por %p759_p5, %p758_p11 }
  0x27   : > { %p761_p9 = pnand %p760_p8, %p754_p12 }
  0x29   : > { %764 = shalt.err (!%p761_p9)
}
  0x2a   : > { %668 = dma.hbm_to_vmem [thread:$0]  (!%p936_p13), %s932_s8, 128, %s940_s10, %s165_s12  }
  0x2b   : > { %p1183_p0 = scmp.lt.s32.totalorder %s831_s18, 3  ;;  %p1184_p1 = scmp.ge.s32.totalorder %s831_s18, 1 }
  0x2d   : > { %p189_p3 = pnand %p1184_p1, %p1183_p0 }
  0x2e   : > { %s974_s7 = sand.u32 (!%p189_p3), 1, %s823_s16  }
  0x2f   : > { %192 = sbr.rel (%p189_p3) target bundleno = 395 (0x18b), region = 36  ;;  %s651_s9 = sshll.u32 (!%p189_p3), %s974_s7, 3 }
  0x30   : > { %s195_s13 = scalar_lea.sflag (!%p189_p3), [#allocation3], %s974_s7  ;;  %s198_s11 = scalar_lea.vmem (!%p189_p3), [#allocation2], %s651_s9 }
  0x36   : > { %810 = dma.done.wait (%p912_p6), %s195_s13, 128  }
  0x37   : > { %812 = vsyncadd (%p912_p6), %s195_s13, 4294967168  ;;  %v834_v0 = vmov 0   ;;  %vm235_vm0 = vcmask 1043456   ;;  %v231_v1 = vld [vmem:[%s198_s11] sm:$0xff]  ;;  %v835_v7 = vmov 1   ;;  %v836_v8 = vmov 2  }
  0x38   : > { %716 = vset.pattern.permute.xlu1 %v834_v0  ;;  %718 = vset.pattern.permute.xlu0 %v834_v0  ;;  %v277_v2 = vld [vmem:[%s1174_s2] sm:$0xf]  ;;  %v233_v3 = vcombine.high %v231_v1, %v231_v1  ;;  %v236_v4 = vsel %vm235_vm0, %v231_v1, 0.0  ;;  %v837_v10 = vmov 3   ;;  %v838_v11 = vmov 4   ;;  %p227_p6 = scmp.lt.s32.totalorder %s890_s19, 1 }
  0x39   : > { %299 = vperm.xlu1 %716, %v277_v2   ;;  %v304_v9 = vld [vmem:[%s1175_s3] sm:$0xf]  ;;  %v839_v12 = vmov 6   ;;  %v840_v13 = vmov 5   ;;  %v841_v14 = vmov 7   ;;  %v246_v17 = vlaneseq  ;;  %s660_s29 = sshll.u32 %s890_s19, 7 }
  0x3a   : > { %v237_v5 = vsel %vm235_vm0, %v233_v3, 0.0  ;;  %v842_v15 = vmov 839922192   ;;  %s228_s14 = scalar_select %p227_p6, %s890_s19, 1 }
  0x3b   : > { %v238_v6 = vadd.f32 %v237_v5, %v236_v4  ;;  %v244_v16 = vunpack.c.l.s4 %v842_v15  ;;  %v247_v19 = vshrl.u32 %v246_v17, 7  ;;  %s226_s30 = scalar_lea.vmem [#allocation5], %s651_s9  ;;  %s1128_s11 = scalar_lea.hbm %s1176_s4, %s660_s29 }
  0x3c   : > { %s653_s20 = sshll.u32 %s228_s14, 1  ;;  %s562_s5 = sshll.u32 %s226_s30, 4  ;;  %s1130_s5 = int_to_ptr.vmem [resolvable:$true] %s562_s5 }
  0x3d   : > { %717 = vset.pattern.permute.xlu1 %v835_v7  ;;  %239 = vadd.xlane.f32.xlu0 %v238_v6  ;;  %v245_v18 = vunpack.c.0.s8 %v244_v16  ;;  %s230_s25 = scalar_lea.vmem %s1173_s1, %s653_s20  ;;  %v1021_v39 = vsub.s32 0, %v247_v19  ;;  %v1023_v40 = vsub.s32 4, %v247_v19  ;;  %s548_s8 = scalar_lea.sflag [#allocation4], %s974_s7 }
  0x3e   : > { %333 = vperm.xlu1 %717, %v277_v2   ;;  %v274_v36 = vld [vmem:[%s230_s25] sm:$0x3]  ;;  %s765_s10 = scalar_lea.vmem %s1130_s5, 128  ;;  %p1185_p12 = scmp.ne.s32.totalorder %s1180_s27, 0 }
  0x3f   : > { %v994_v20 = vsub.s32 %v245_v18, %v247_v19  ;;  %v1016_v37 = vunpack.c.0.s8 %v274_v36  ;;  %p766_p11 = scmp.ne.s32.totalorder %s1130_s5, %s765_s10  ;;  %s843_s19 = smov [#allocation5]  }
  0x40   : > { %s769_s9 = sshll.u32 %s843_s19, 4  ;;  %s770_s9 = int_to_ptr.vmem [resolvable:$false] %s769_s9 }
  0x41   : > { %vm276_vm1 = vcmp.eq.s32.totalorder %v1016_v37, 0  ;;  %vm312_vm2 = vcmp.eq.s32.totalorder %v1016_v37, 1  ;;  %vm344_vm3 = vcmp.eq.s32.totalorder %v1016_v37, 2  ;;  %vm376_vm4 = vcmp.eq.s32.totalorder %v1016_v37, 3  ;;  %p767_p13 = pnand %p766_p11, %p1185_p12  ;;  %s771_s26 = scalar_lea.vmem %s770_s9, 256 }
  0x42   : > { %719 = vset.pattern.permute.xlu1 %v836_v8  ;;  %v278_v41 = vsel %vm276_vm1, 1, %v834_v0  ;;  %v313_v43 = vsel %vm312_vm2, 1, %v834_v0  ;;  %v345_v48 = vsel %vm344_vm3, 1, %v834_v0  ;;  %v377_v52 = vsel %vm376_vm4, 1, %v834_v0  ;;  %p772_p10 = scmp.lt.s32.totalorder %s1130_s5, %s770_s9  ;;  %p773_p2 = scmp.lt.s32.totalorder %s771_s26, %s765_s10 }
  0x43   : > { %365 = vperm.xlu1 %719, %v277_v2   ;;  %v282_v44 = vrot.slane %v278_v41, %v1021_v39  ;;  %v286_v45 = vrot.slane %v278_v41, %v1023_v40  ;;  %v317_v46 = vrot.slane %v313_v43, %v1021_v39  ;;  %v321_v47 = vrot.slane %v313_v43, %v1023_v40  ;;  %p768_p7 = pneg %p767_p13 }
  0x44   : > { %v349_v53 = vrot.slane %v345_v48, %v1021_v39  ;;  %v353_v54 = vrot.slane %v345_v48, %v1023_v40  ;;  %vm408_vm5 = vcmp.eq.s32.totalorder %v1016_v37, 4  ;;  %v381_v57 = vrot.slane %v377_v52, %v1021_v39  ;;  %p774_p4 = por %p773_p2, %p772_p10 }
  0x45   : > { %v290_v50 = vrot.slane %v282_v44, %v1021_v39  ;;  %v294_v51 = vrot.slane %v286_v45, %v1021_v39  ;;  %v325_v55 = vrot.slane %v317_v46, %v1021_v39  ;;  %v329_v56 = vrot.slane %v321_v47, %v1021_v39 }
  0x46   : > { %v385_v58 = vrot.slane %v377_v52, %v1023_v40  ;;  %v409_v59 = vsel %vm408_vm5, 1, %v834_v0  ;;  %vm440_vm8 = vcmp.eq.s32.totalorder %v1016_v37, 5  ;;  %v357_v60 = vrot.slane %v349_v53, %v1021_v39  ;;  %p775_p5 = pnand %p774_p4, %p768_p7 }
  0x47   : > { %720 = vset.pattern.permute.xlu1 %v835_v7  ;;  %vm295_vm6 = vcmp.eq.s32.totalorder %v290_v50, 1  ;;  %vm296_vm7 = vcmp.eq.s32.totalorder %v294_v51, 1  ;;  %v361_v61 = vrot.slane %v353_v54, %v1021_v39  ;;  %vm330_vm9 = vcmp.eq.s32.totalorder %v325_v55, 1 }
  0x48   : > { %339 = vperm.xlu1 %720, %v304_v9   ;;  %vm331_vm10 = vcmp.eq.s32.totalorder %v329_v56, 1  ;;  %vm472_vm11 = vcmp.eq.s32.totalorder %v1016_v37, 6  ;;  %v441_v3 = vsel %vm440_vm8, 1, %v834_v0  ;;  %v389_v4 = vrot.slane %v381_v57, %v1021_v39 }
  0x49   : > { %v393_v5 = vrot.slane %v385_v58, %v1021_v39  ;;  %v417_v6 = vrot.slane %v409_v59, %v1023_v40  ;;  %vm362_vm12 = vcmp.eq.s32.totalorder %v357_v60, 1  ;;  %vm363_vm13 = vcmp.eq.s32.totalorder %v361_v61, 1 }
  0x4a   : > { %vm504_vm14 = vcmp.eq.s32.totalorder %v1016_v37, 7  ;;  %vm394_vm15 = vcmp.eq.s32.totalorder %v389_v4, 1 }
  0x4b   : > { %v425_v17 = vrot.slane %v417_v6, %v1021_v39 }
  0x4c   : > { %721 = vset.pattern.permute.xlu1 %v837_v10 }
  0x4d   : > { %397 = vperm.xlu1 %721, %v277_v2   ;;  %vm427_vm2 = vcmp.eq.s32.totalorder %v425_v17, 1 }
  0x51   : > { %722 = vset.pattern.permute.xlu1 %v836_v8 }
  0x52   : > { %371 = vperm.xlu1 %722, %v304_v9  }
  0x53   : > { %307 = vperm.xlu0 %718, %v304_v9  }
  0x56   : > { %723 = vset.pattern.permute.xlu1 %v838_v11 }
  0x57   : > { %429 = vperm.xlu1 %723, %v277_v2   ;;  %730 = vset.pattern.permute.xlu0 %v839_v12 }
  0x5b   : > { %724 = vset.pattern.permute.xlu1 %v837_v10  ;;  %v445_v10 = vrot.slane %v441_v3, %v1021_v39 }
  0x5c   : > { %403 = vperm.xlu1 %724, %v304_v9  }
  0x60   : > { %725 = vset.pattern.permute.xlu1 %v840_v13 }
  0x61   : > { %461 = vperm.xlu1 %725, %v277_v2  }
  0x65   : > { %726 = vset.pattern.permute.xlu1 %v838_v11  ;;  %v473_v11 = vsel %vm472_vm11, 1, %v834_v0 }
  0x66   : > { %435 = vperm.xlu1 %726, %v304_v9  }
  0x6a   : > { %727 = vset.pattern.permute.xlu1 %v839_v12 }
  0x6b   : > { %493 = vperm.xlu1 %727, %v277_v2  }
  0x6f   : > { %728 = vset.pattern.permute.xlu1 %v840_v13  ;;  %v449_v13 = vrot.slane %v441_v3, %v1023_v40 }
  0x70   : > { %467 = vperm.xlu1 %728, %v304_v9  }
  0x74   : > { %729 = vset.pattern.permute.xlu1 %v841_v14 }
  0x75   : > { %525 = vperm.xlu1 %729, %v277_v2   ;;  %v413_v2 = vrot.slane %v409_v59, %v1021_v39 }
  0x77   : > { %v421_v12 = vrot.slane %v413_v2, %v1021_v39 }
  0x79   : > { %531 = vperm.xlu1 %729, %v304_v9   ;;  %vm426_vm1 = vcmp.eq.s32.totalorder %v421_v12, 1 }
  0xb8   : > { %v300_v30 = vpop.permute.xlu1 %299 }
  0xb9   : > { %v302_v63 = vsel %vm295_vm6, %v300_v30, 0.0 }
  0xbd   : > { %v334_v31 = vpop.permute.xlu1 %333 }
  0xbe   : > { %v336_v8 = vsel %vm330_vm9, %v334_v31, %v302_v63 }
  0xc2   : > { %v1003_v32 = vpop.permute.xlu1 %365 }
  0xc3   : > { %v368_v18 = vsel %vm362_vm12, %v1003_v32, %v336_v8 }
  0xc7   : > { %v1006_v33 = vpop.permute.xlu1 %339 }
  0xca   : > { %v240_v21 = vpop.xlane.xlu0 %239 }
  0xcb   : > { %v241_v22 = vmul.f32 0.00390625, %v240_v21  ;;  %v477_v21 = vrot.slane %v473_v11, %v1021_v39 }
  0xcc   : > { %v1009_v34 = vpop.permute.xlu1 %397 }
  0xcd   : > { %v249_v23 = vrot.slane %v241_v22, %v994_v20  ;;  %v505_v22 = vsel %vm504_vm14, 1, %v834_v0  ;;  %v485_v44 = vrot.slane %v477_v21, %v1021_v39 }
  0xce   : > { %v509_v41 = vrot.slane %v505_v22, %v1021_v39  ;;  %v513_v43 = vrot.slane %v505_v22, %v1023_v40 }
  0xcf   : > { %v997_v24 = vsub.f32 %v231_v1, %v249_v23  ;;  %v303_v1 = vsel %vm296_vm7, %v300_v30, 0.0  ;;  %v457_v30 = vrot.slane %v449_v13, %v1021_v39  ;;  %vm490_vm5 = vcmp.eq.s32.totalorder %v485_v44, 1 }
  0xd0   : > { %v521_v48 = vrot.slane %v513_v43, %v1021_v39 }
  0xd1   : > { %v252_v25 = vmul.f32 %v997_v24, %v997_v24  ;;  %v1014_v35 = vpop.permute.xlu1 %371  ;;  %vm459_vm4 = vcmp.eq.s32.totalorder %v457_v30, 1 }
  0xd2   : > { %v308_v7 = vpop.permute.xlu0 %307  ;;  %vm523_vm8 = vcmp.eq.s32.totalorder %v521_v48, 1 }
  0xd3   : > { %v254_v26 = vcombine.high %v252_v25, %v252_v25  ;;  %v256_v27 = vsel %vm235_vm0, %v252_v25, 0.0  ;;  %v310_v15 = vsel %vm295_vm6, %v308_v7, 0.0  ;;  %v311_v16 = vsel %vm296_vm7, %v308_v7, 0.0 }
  0xd4   : > { %v481_v25 = vrot.slane %v473_v11, %v1023_v40  ;;  %v517_v40 = vrot.slane %v509_v41, %v1021_v39 }
  0xd5   : > { %v257_v28 = vsel %vm235_vm0, %v254_v26, 0.0  ;;  %vm395_vm0 = vcmp.eq.s32.totalorder %v393_v5, 1  ;;  %v342_v26 = vsel %vm330_vm9, %v1006_v33, %v310_v15 }
  0xd6   : > { %v258_v29 = vadd.f32 %v257_v28, %v256_v27  ;;  %v1018_v38 = vpop.permute.xlu1 %429  ;;  %v343_v27 = vsel %vm331_vm10, %v1006_v33, %v311_v16  ;;  %v374_v36 = vsel %vm362_vm12, %v1014_v35, %v342_v26  ;;  %v489_v45 = vrot.slane %v481_v25, %v1021_v39 }
  0xd7   : > { %v375_v33 = vsel %vm363_vm13, %v1014_v35, %v343_v27  ;;  %vm522_vm7 = vcmp.eq.s32.totalorder %v517_v40, 1 }
  0xd8   : > { %259 = vadd.xlane.f32.xlu0 %v258_v29  ;;  %v453_v29 = vrot.slane %v445_v10, %v1021_v39  ;;  %vm491_vm6 = vcmp.eq.s32.totalorder %v489_v45, 1 }
  0xda   : > { %vm458_vm3 = vcmp.eq.s32.totalorder %v453_v29, 1 }
  0xdb   : > { %v1027_v42 = vpop.permute.xlu1 %403 }
  0xdc   : > { %v406_v35 = vsel %vm394_vm15, %v1027_v42, %v374_v36  ;;  %v407_v47 = vsel %vm395_vm0, %v1027_v42, %v375_v33 }
  0xe0   : > { %v1037_v49 = vpop.permute.xlu1 %461 }
  0xe5   : > { %v1053_v62 = vpop.permute.xlu1 %435 }
  0xe6   : > { %v439_v52 = vsel %vm427_vm2, %v1053_v62, %v407_v47 }
  0xee   : > { %499 = vperm.xlu0 %730, %v304_v9   ;;  %v337_v9 = vsel %vm331_vm10, %v334_v31, %v303_v1  ;;  %v400_v31 = vsel %vm394_vm15, %v1009_v34, %v368_v18 }
  0xef   : > { %v369_v19 = vsel %vm363_vm13, %v1003_v32, %v337_v9 }
  0xf0   : > { %v401_v0 = vsel %vm395_vm0, %v1009_v34, %v369_v19  ;;  %v432_v34 = vsel %vm426_vm1, %v1018_v38, %v400_v31 }
  0xf1   : > { %v433_v46 = vsel %vm427_vm2, %v1018_v38, %v401_v0  ;;  %v464_v50 = vsel %vm458_vm3, %v1037_v49, %v432_v34  ;;  %v438_v38 = vsel %vm426_vm1, %v1053_v62, %v406_v35 }
  0xf2   : > { %731 = vset.pattern.permute.xlu0 %v841_v14  ;;  %v494_v14 = vpop.permute.xlu1 %493  ;;  %v465_v51 = vsel %vm459_vm4, %v1037_v49, %v433_v46 }
  0xf3   : > { %v496_v54 = vsel %vm490_vm5, %v494_v14, %v464_v50  ;;  %v497_v55 = vsel %vm491_vm6, %v494_v14, %v465_v51 }
  0xf6   : > { %v468_v37 = vpop.permute.xlu1 %467 }
  0xf7   : > { %v470_v39 = vsel %vm458_vm3, %v468_v37, %v438_v38  ;;  %v471_v49 = vsel %vm459_vm4, %v468_v37, %v439_v52 }
  0xfa   : > { %v526_v53 = vpop.permute.xlu1 %525 }
  0xfb   : > { %v528_v60 = vsel %vm522_vm7, %v526_v53, %v496_v54  ;;  %v529_v61 = vsel %vm523_vm8, %v526_v53, %v497_v55 }
  0xfc   : > { %v538_v2 = vcombine.low %v528_v60, %v529_v61 }
  0xfe   : > { %v532_v58 = vpop.permute.xlu1 %531 }
 0x165   : > { %v260_v23 = vpop.xlane.xlu0 %259 }
 0x166   : > { %v261_v28 = vmul.f32 0.00390625, %v260_v23 }
 0x168   : > { %v262_v32 = vadd.f32 1e-05, %v261_v28 }
 0x16a   : > { %733 = vrsqrt.f32 %v262_v32 }
 0x16d   : > { %v500_v42 = vpop.permute.xlu0 %499 }
 0x16e   : > { %v502_v56 = vsel %vm490_vm5, %v500_v42, %v470_v39  ;;  %v503_v57 = vsel %vm491_vm6, %v500_v42, %v471_v49 }
 0x16f   : > { %v534_v63 = vsel %vm522_vm7, %v532_v58, %v502_v56  ;;  %v535_v1 = vsel %vm523_vm8, %v532_v58, %v503_v57 }
 0x170   : > { %v543_v5 = vcombine.low %v534_v63, %v535_v1 }
 0x174   : > { %v734_v59 = vpop.eup %733 }
 0x175   : > { %v271_v62 = vrot.slane %v734_v59, %v994_v20 }
 0x177   : > { %v273_v3 = vmul.f32 %v271_v62, %v997_v24 }
 0x179   : > { %v540_v4 = vmul.f32 %v538_v2, %v273_v3 }
 0x17b   : > { %v545_v6 = vadd.f32 %v543_v5, %v540_v4 }
 0x17d   : > { %546 = vst [vmem:[%s226_s30] sm:$0xff] %v545_v6 }
 0x17e   : > { %778 = shalt.err (!%p775_p5)
}
 0x17f   : > { %s779_s7 = scalar_lea.hbm %s1128_s11, 128  ;;  %s783_s20 = scalar_lea.hbm %s1176_s4, 256 }
 0x180   : > { %p780_p8 = scmp.ne.s32.totalorder %s1128_s11, %s779_s7  ;;  %p784_p1 = scmp.lt.u32.totalorder %s1128_s11, %s1176_s4 }
 0x181   : > { %p785_p3 = scmp.lt.u32.totalorder %s783_s20, %s779_s7  ;;  %p787_p11 = scmp.lt.u32.totalorder %s779_s7, %s1128_s11 }
 0x182   : > { %p781_p9 = pnand %p780_p8, %p1185_p12 }
 0x183   : > { %p786_p6 = por %p785_p3, %p784_p1 }
 0x184   : > { %p782_p0 = pneg %p781_p9 }
 0x185   : > { %p788_p13 = por %p787_p11, %p786_p6 }
 0x187   : > { %p789_p7 = pnand %p788_p13, %p782_p0 }
 0x189   : > { %792 = shalt.err (!%p789_p7)
}
 0x18a   : > { %663 = dma.vmem_to_hbm [thread:$0]  (%p1185_p12), %s1130_s5, 128, %s1128_s11, %s548_s8  }
 0x18b PF: > { %s574_s25 = sand.u32 1, %s819_s15   ;;  %p1186_p10 = scmp.ne.s32.totalorder %s1181_s28, 0 }
 0x18c   : > { %p1187_p2 = scmp.ge.s32.totalorder %s831_s18, 2  ;;  %s575_s29 = scalar_lea.sflag [#allocation4], %s574_s25 }
 0x18e   : > { %p670_p4 = pnand %p1187_p2, %p1186_p10 }
 0x190   : > { %814 = dma.done.wait (!%p670_p4), %s575_s29, 128  }
 0x191   : > { %816 = vsyncadd (!%p670_p4), %s575_s29, 4294967168  ;;  %p17_p5 = scmp.ge.s32.totalorder %s894_s21, 4   ;;  %s1188_s15 = smov %s823_s16 }
 0x192   : > { %s1189_s16 = smov %s827_s17  ;;  %s1190_s17 = smov %s906_s24 }
 0x193   : > { %s1191_s18 = smov %s894_s21  ;;  %19 = sbr.rel (!%p17_p5) target bundleno = 5 (0x5), region = 84 }
 0x19a   :  { %580 = vsyncpa [#allocation3], 1 }
 0x19b   :  { %582 = vsyncpa [#allocation3 + $0x1], 1 }
 0x19c   :  { %583 = vsyncpa [#allocation4], 1 }
 0x19d   :  { %585 = vsyncpa [#allocation4 + $0x1], 1 }

</bundles_post_ra>
